<compile_context>
chip_gen: v7x
topology: tpu7x:2x2x1
jax: 0.10.0
libtpu: 0.0.40
codegen_flags: <defaults>
</compile_context>

<pallas_src>
import math

import jax
import jax.numpy as jnp
from jax import lax
from jax.experimental import pallas as pl
from jax.experimental.pallas import tpu as pltpu


def _round_up(x: int, m: int) -> int:
    return ((x + m - 1) // m) * m


def _cdiv(a: int, b: int) -> int:
    return (a + b - 1) // b


def _device_defaults():
    """Generation-aware tile / VMEM defaults. Falls back to conservative values."""
    kind = ""
    try:
        kind = jax.devices()[0].device_kind.lower()
    except Exception:
        pass
    if "v7" in kind or "tpu7" in kind or "7x" in kind:
        # 64 MiB VMEM/TC, 3.2 TB/s HBM, 2 TCs -> TM=512 already MXU-bound; keep headroom.
        return {"tm": 512, "tf": 512, "vmem": 56 * 1024 * 1024, "multi_tc": True}
    if "v6" in kind:
        # 128 MiB VMEM, ~1.4 TB/s HBM, 918 TF/s -> needs big TM to get MXU-bound.
        return {"tm": 1024, "tf": 1024, "vmem": 100 * 1024 * 1024, "multi_tc": False}
    if "v5" in kind:
        # ~0.82 TB/s HBM, 197 TF/s MXU -> roughly balanced around TM~256; 512 is safe.
        return {"tm": 512, "tf": 1024, "vmem": 96 * 1024 * 1024, "multi_tc": False}
    return {"tm": 512, "tf": 512, "vmem": 48 * 1024 * 1024, "multi_tc": False}


def _ffn_kernel(x_ref, w1_ref, b1_ref, w2_ref, b2_ref, o_ref, acc_ref):
    # x_ref: (TM, D)   w1_ref: (D, TF)   b1_ref: (1, TF)
    # w2_ref: (TF, D)  b2_ref: (1, D)    o_ref: (TM, D)   acc_ref: (TM, D) f32
    f = pl.program_id(1)

    @pl.when(f == 0)
    def _():
        acc_ref[...] = jnp.zeros_like(acc_ref)

    # First matmul: native-dtype operands (bf16 MXU path when inputs are bf16), f32 acc.
    h = jnp.dot(x_ref[...], w1_ref[...], preferred_element_type=jnp.float32)
    h = h + b1_ref[...].astype(jnp.float32)

    # Exact (erf-based) GELU in f32, matching torch.nn.GELU() default.
    # NOTE: switch to jax.nn.gelu(approximate=True) (tanh form -> EUP slot) only if a
    # bundle profile shows the VALU slot saturating; it no longer bit-matches torch.
    h = 0.5 * h * (1.0 + lax.erf(h * (1.0 / math.sqrt(2.0))))

    # TODO(synk): nn.Dropout is identity in eval/inference mode; no RNG masking applied.

    # Second matmul: cast hidden tile back to the weight dtype for the MXU,
    # accumulate the partial product over ff tiles in f32.
    acc_ref[...] += jnp.dot(h.astype(w2_ref.dtype), w2_ref[...],
                            preferred_element_type=jnp.float32)

    @pl.when(f == pl.num_programs(1) - 1)
    def _():
        o_ref[...] = (acc_ref[...] + b2_ref[...].astype(jnp.float32)).astype(o_ref.dtype)


def prepare_ffn_params(w1, b1, w2, b2, *, tf=None, weight_dtype=None):
    """Transpose + lane-pad PyTorch-layout weights once (hoisted out of the forward path).

    w1: (F, D), b1: (F,), w2: (D, F), b2: (D,)  ->  kernel layout (D_p, F_p)/(F_p, D_p).
    Zero padding is exact: padded x/W1 columns contribute 0, padded hidden columns are
    GELU(0)=0, padded output columns are sliced off.

    weight_dtype: optionally down-cast weights/biases (e.g. jnp.bfloat16) to halve the
    dominant weight HBM stream and keep the MXU on its full-rate bf16 path.
    """
    if weight_dtype is not None:
        w1, b1, w2, b2 = (t.astype(weight_dtype) for t in (w1, b1, w2, b2))

    F, D = w1.shape
    D_p = _round_up(D, 128)
    if tf is None:
        tf = _device_defaults()["tf"]
    TF = min(_round_up(tf, 128), _round_up(F, 128))
    F_p = _round_up(F, TF)

    w1_t = jnp.zeros((D_p, F_p), w1.dtype).at[:D, :F].set(w1.T)
    b1_p = jnp.zeros((1, F_p), b1.dtype).at[0, :F].set(b1)
    w2_t = jnp.zeros((F_p, D_p), w2.dtype).at[:F, :D].set(w2.T)
    b2_p = jnp.zeros((1, D_p), b2.dtype).at[0, :D].set(b2)
    return {"w1_t": w1_t, "b1": b1_p, "w2_t": w2_t, "b2": b2_p,
            "D": D, "F": F, "D_p": D_p, "F_p": F_p, "TF": TF}


def _vmem_bytes(TM, TF, D_p, x_itemsize, w_itemsize):
    """Rough VMEM footprint: double-buffered x/out/W1/W2 tiles + f32 acc + biases."""
    return (2 * TM * D_p * x_itemsize          # x tile (double-buffered)
            + 2 * TM * D_p * x_itemsize        # out tile
            + TM * D_p * 4                     # f32 accumulator scratch
            + 2 * D_p * TF * w_itemsize        # W1 tile
            + 2 * TF * D_p * w_itemsize        # W2 tile
            + 2 * (TF + D_p) * w_itemsize)     # biases (padded; negligible)


def feed_forward(x, params, *, tm=None, vmem_limit_bytes=None):
    """x: (B, S, D) -> (B, S, D). `params` from prepare_ffn_params.

    Tile sizes / VMEM cap default to generation-aware values (see _device_defaults) and
    are clamped to the padded problem size and to ~90% of the VMEM budget.
    """
    defaults = _device_defaults()
    if tm is None:
        tm = defaults["tm"]
    if vmem_limit_bytes is None:
        vmem_limit_bytes = defaults["vmem"]

    B, S, D = x.shape
    assert D == params["D"], "x feature dim must match prepared weights"
    D_p, F_p, TF = params["D_p"], params["F_p"], params["TF"]
    M = B * S

    x_itemsize = jnp.dtype(x.dtype).itemsize
    w_itemsize = jnp.dtype(params["w1_t"].dtype).itemsize
    # Sublane packing: 8 rows per vreg for 32-bit, 16 for bf16, 32 for int8/fp8.
    pack = max(8, 32 // x_itemsize)

    # Row tile: multiple of the sublane pack; clamp to the (padded) row count.
    TM = max(pack, min(_round_up(tm, pack), _round_up(M, pack)))

    # Megacore (v7x, 2 TCs): keep an even number of row tiles so both cores get work.
    if defaults["multi_tc"] and M > pack:
        n_row = _cdiv(M, TM)
        if n_row % 2 == 1:
            n_row = 2 if n_row == 1 else n_row + 1
            TM = max(pack, _round_up(_cdiv(M, n_row), pack))

    # VMEM-budget clamp (mostly matters on v7x's 64 MiB VMEM with large D/TF).
    budget = int(0.9 * vmem_limit_bytes)
    while TM > pack and _vmem_bytes(TM, TF, D_p, x_itemsize, w_itemsize) > budget:
        TM = max(pack, _round_up(TM // 2, pack))

    M_p = _round_up(M, TM)

    x2d = x.reshape(M, D)
    if (M_p, D_p) != (M, D):
        x2d = jnp.zeros((M_p, D_p), x.dtype).at[:M, :D].set(x2d)

    grid = (M_p // TM, F_p // TF)
    n_row_tiles = grid[0]

    # Truthful HBM-traffic estimate: x/out once, weights re-streamed once per row tile.
    w_bytes = (params["w1_t"].size + params["w2_t"].size) * w_itemsize \
        + (params["b1"].size * jnp.dtype(params["b1"].dtype).itemsize
           + params["b2"].size * jnp.dtype(params["b2"].dtype).itemsize)
    cost = pl.CostEstimate(
        flops=4 * M_p * F_p * D_p,            # two matmuls, 2*M*F*D flops each
        transcendentals=M_p * F_p,            # one erf per hidden element
        bytes_accessed=2 * M_p * D_p * x_itemsize + n_row_tiles * w_bytes,
    )

    out = pl.pallas_call(
        _ffn_kernel,
        out_shape=jax.ShapeDtypeStruct((M_p, D_p), x.dtype),
        grid_spec=pltpu.PrefetchScalarGridSpec(
            num_scalar_prefetch=0,
            grid=grid,
            in_specs=[
                pl.BlockSpec((TM, D_p), lambda i, f: (i, 0)),    # x row tile
                pl.BlockSpec((D_p, TF), lambda i, f: (0, f)),    # W1^T column tile
                pl.BlockSpec((1, TF), lambda i, f: (0, f)),      # b1 tile
                pl.BlockSpec((TF, D_p), lambda i, f: (f, 0)),    # W2^T row tile
                pl.BlockSpec((1, D_p), lambda i, f: (0, 0)),     # b2
                # NOTE: add pipeline_mode=pl.Buffered(3) on W1/W2 only if a profile shows
                # exposed DMA while compute-bound (most likely v5e); it costs scarce VMEM.
            ],
            out_specs=pl.BlockSpec((TM, D_p), lambda i, f: (i, 0)),
            scratch_shapes=[pltpu.VMEM((TM, D_p), jnp.float32)],
        ),
        compiler_params=pltpu.CompilerParams(
            # Row tiles are independent -> megacore parallel; ff axis is the reduction.
            dimension_semantics=("parallel", "arbitrary"),
            vmem_limit_bytes=vmem_limit_bytes,
        ),
        cost_estimate=cost,
    )(x2d, params["w1_t"], params["b1"], params["w2_t"], params["b2"])

    return out[:M, :D].reshape(B, S, D)


def _kaiming_normal(key, out_features, in_features, dtype=jnp.float32):
    # torch.nn.init.kaiming_normal_: std = sqrt(2 / fan_in), fan_in = in_features
    std = math.sqrt(2.0 / in_features)
    return (std * jax.random.normal(key, (out_features, in_features))).astype(dtype)


def _ref_ffn(x, w1, b1, w2, b2):
    # Pure-JAX f32 reference of Linear -> GELU(exact) -> Dropout(eval) -> Linear.
    xf = x.astype(jnp.float32)
    h = xf @ w1.astype(jnp.float32).T + b1.astype(jnp.float32)
    h = 0.5 * h * (1.0 + lax.erf(h / math.sqrt(2.0)))
    return h @ w2.astype(jnp.float32).T + b2.astype(jnp.float32)


if __name__ == "__main__":
    key = jax.random.PRNGKey(0)
    kx, kw1, kw2 = jax.random.split(key, 3)

    # --- Test 1: f32, aligned shapes, forced multi-tile grid (row tiling + ff reduction) ---
    batch, seq_len, dim_model, dim_ff = 2, 64, 128, 512
    x = jax.random.normal(kx, (batch, seq_len, dim_model), dtype=jnp.float32)
    w1 = _kaiming_normal(kw1, dim_ff, dim_model)      # (dim_ff, dim_model)
    b1 = jnp.zeros((dim_ff,), jnp.float32)
    w2 = _kaiming_normal(kw2, dim_model, dim_ff)      # (dim_model, dim_ff)
    b2 = jnp.zeros((dim_model,), jnp.float32)

    params = prepare_ffn_params(w1, b1, w2, b2, tf=256)   # 2 ff tiles
    y = feed_forward(x, params, tm=64)                    # >=2 row tiles
    jax.block_until_ready(y)
    y_ref = _ref_ffn(x, w1, b1, w2, b2)
    assert jnp.allclose(y, y_ref, atol=1e-3, rtol=1e-3), "f32 mismatch"

    # --- Test 2: bf16 operands (MXU-native path), unaligned small shapes -> padding,
    #             generation-aware default tiles/VMEM cap ---
    batch, seq_len, dim_model, dim_ff = 2, 8, 32, 64
    xb = jax.random.normal(kx, (batch, seq_len, dim_model),
                           dtype=jnp.float32).astype(jnp.bfloat16)
    w1b = _kaiming_normal(kw1, dim_ff, dim_model, dtype=jnp.bfloat16)
    b1b = jnp.zeros((dim_ff,), jnp.bfloat16)
    w2b = _kaiming_normal(kw2, dim_model, dim_ff, dtype=jnp.bfloat16)
    b2b = jnp.zeros((dim_model,), jnp.bfloat16)

    params_b = prepare_ffn_params(w1b, b1b, w2b, b2b, weight_dtype=jnp.bfloat16)
    yb = feed_forward(xb, params_b)
    jax.block_until_ready(yb)
    yb_ref = _ref_ffn(xb, w1b, b1b, w2b, b2b)
    assert jnp.allclose(yb.astype(jnp.float32), yb_ref, atol=5e-2, rtol=5e-2), "bf16 mismatch"

    print("KERNEL_OK")
</pallas_src>

<mosaic_0001>
module attributes {stable_mosaic.version = 11 : i64} {
  func.func @_ffn_kernel(%arg0: i32, %arg1: i32, %arg2: memref<64x128xf32, #tpu.memory_space<vmem>>, %arg3: memref<128x256xf32, #tpu.memory_space<vmem>>, %arg4: memref<1x256xf32, #tpu.memory_space<vmem>>, %arg5: memref<256x128xf32, #tpu.memory_space<vmem>>, %arg6: memref<1x128xf32, #tpu.memory_space<vmem>>, %arg7: memref<64x128xf32, #tpu.memory_space<vmem>>, %arg8: memref<64x128xf32, #tpu.memory_space<vmem>>) attributes {dimension_semantics = [#tpu.dimension_semantics<parallel>, #tpu.dimension_semantics<arbitrary>], iteration_bounds = array<i64: 2, 2>, scalar_prefetch = 0 : i64, scratch_operands = 1 : i64, tpu.core_type = #tpu.core_type<tc>, window_params = [{transform_indices = @transform_0, window_bounds = array<i64: 64, 128>}, {transform_indices = @transform_1, window_bounds = array<i64: 128, 256>}, {transform_indices = @transform_2, window_bounds = array<i64: 1, 256>}, {transform_indices = @transform_3, window_bounds = array<i64: 256, 128>}, {pipeline_mode = #tpu.pipeline_mode<synchronous>, transform_indices = @transform_4, window_bounds = array<i64: 1, 128>}, {transform_indices = @transform_5, window_bounds = array<i64: 64, 128>}]} {
    %c0_i32 = arith.constant 0 : i32
    %0 = arith.cmpi eq, %arg1, %c0_i32 : i32
    %1 = arith.extui %0 : i1 to i32
    %c0_i32_0 = arith.constant 0 : i32
    %2 = arith.cmpi ne, %1, %c0_i32_0 : i32
    scf.if %2 {
      %cst_17 = arith.constant 0.000000e+00 : f32
      %25 = vector.broadcast %cst_17 : f32 to vector<64x128xf32>
      %c0_18 = arith.constant 0 : index
      %c0_19 = arith.constant 0 : index
      %26 = vector.load %arg8[%c0_18, %c0_19] : memref<64x128xf32, #tpu.memory_space<vmem>>, vector<64x128xf32>
      tpu.vector_store %arg8[%c0_18, %c0_19], %25 {strides = array<i32>} : memref<64x128xf32, #tpu.memory_space<vmem>>, vector<64x128xf32>,
    } else {
    }
    %c0 = arith.constant 0 : index
    %c0_1 = arith.constant 0 : index
    %3 = vector.load %arg2[%c0, %c0_1] : memref<64x128xf32, #tpu.memory_space<vmem>>, vector<64x128xf32>
    %c0_2 = arith.constant 0 : index
    %c0_3 = arith.constant 0 : index
    %4 = vector.load %arg3[%c0_2, %c0_3] : memref<128x256xf32, #tpu.memory_space<vmem>>, vector<128x256xf32>
    %cst = arith.constant dense<0.000000e+00> : vector<64x256xf32>
    %5 = tpu.matmul %3, %4, %cst {dimension_numbers = #tpu.dot_dimension_numbers<[1], [0], [0], [1], [0, 0, 1, 1], [], []>} : vector<64x128xf32>, vector<128x256xf32>, vector<64x256xf32> -> vector<64x256xf32>
    %c0_4 = arith.constant 0 : index
    %c0_5 = arith.constant 0 : index
    %6 = vector.load %arg4[%c0_4, %c0_5] : memref<1x256xf32, #tpu.memory_space<vmem>>, vector<1x256xf32>
    %7 = vector.broadcast %6 : vector<1x256xf32> to vector<64x256xf32>
    %8 = arith.addf %5, %7 : vector<64x256xf32>
    %cst_6 = arith.constant 5.000000e-01 : f32
    %9 = vector.broadcast %cst_6 : f32 to vector<64x256xf32>
    %10 = arith.mulf %9, %8 : vector<64x256xf32>
    %cst_7 = arith.constant 0.707106769 : f32
    %11 = vector.broadcast %cst_7 : f32 to vector<64x256xf32>
    %12 = arith.mulf %8, %11 : vector<64x256xf32>
    %13 = math.erf %12 : vector<64x256xf32>
    %cst_8 = arith.constant 1.000000e+00 : f32
    %14 = vector.broadcast %cst_8 : f32 to vector<64x256xf32>
    %15 = arith.addf %14, %13 : vector<64x256xf32>
    %16 = arith.mulf %10, %15 : vector<64x256xf32>
    %c0_9 = arith.constant 0 : index
    %c0_10 = arith.constant 0 : index
    %17 = vector.load %arg8[%c0_9, %c0_10] : memref<64x128xf32, #tpu.memory_space<vmem>>, vector<64x128xf32>
    %c0_11 = arith.constant 0 : index
    %c0_12 = arith.constant 0 : index
    %18 = vector.load %arg5[%c0_11, %c0_12] : memref<256x128xf32, #tpu.memory_space<vmem>>, vector<256x128xf32>
    %cst_13 = arith.constant dense<0.000000e+00> : vector<64x128xf32>
    %19 = tpu.matmul %16, %18, %cst_13 {dimension_numbers = #tpu.dot_dimension_numbers<[1], [0], [0], [1], [0, 0, 1, 1], [], []>} : vector<64x256xf32>, vector<256x128xf32>, vector<64x128xf32> -> vector<64x128xf32>
    %20 = arith.addf %17, %19 : vector<64x128xf32>
    %c0_14 = arith.constant 0 : index
    %c0_15 = arith.constant 0 : index
    %21 = vector.load %arg8[%c0_14, %c0_15] : memref<64x128xf32, #tpu.memory_space<vmem>>, vector<64x128xf32>
    tpu.vector_store %arg8[%c0_14, %c0_15], %20 {strides = array<i32>} : memref<64x128xf32, #tpu.memory_space<vmem>>, vector<64x128xf32>,
    %c1_i32 = arith.constant 1 : i32
    %22 = arith.cmpi eq, %arg1, %c1_i32 : i32
    %23 = arith.extui %22 : i1 to i32
    %c0_i32_16 = arith.constant 0 : i32
    %24 = arith.cmpi ne, %23, %c0_i32_16 : i32
    scf.if %24 {
      %c0_17 = arith.constant 0 : index
      %c0_18 = arith.constant 0 : index
      %25 = vector.load %arg8[%c0_17, %c0_18] : memref<64x128xf32, #tpu.memory_space<vmem>>, vector<64x128xf32>
      %c0_19 = arith.constant 0 : index
      %c0_20 = arith.constant 0 : index
      %26 = vector.load %arg6[%c0_19, %c0_20] : memref<1x128xf32, #tpu.memory_space<vmem>>, vector<1x128xf32>
      %27 = vector.broadcast %26 : vector<1x128xf32> to vector<64x128xf32>
      %28 = arith.addf %25, %27 : vector<64x128xf32>
      %c0_21 = arith.constant 0 : index
      %c0_22 = arith.constant 0 : index
      %29 = vector.load %arg7[%c0_21, %c0_22] : memref<64x128xf32, #tpu.memory_space<vmem>>, vector<64x128xf32>
      tpu.vector_store %arg7[%c0_21, %c0_22], %28 {strides = array<i32>} : memref<64x128xf32, #tpu.memory_space<vmem>>, vector<64x128xf32>,
    } else {
    }
    return
  }
  func.func @transform_0(%arg0: i32, %arg1: i32) -> (i32, i32) {
    %c0_i32 = arith.constant 0 : i32
    %c0_i32_0 = arith.constant 0 : i32
    return %arg0, %c0_i32 : i32, i32
  }
  func.func @transform_1(%arg0: i32, %arg1: i32) -> (i32, i32) {
    %c0_i32 = arith.constant 0 : i32
    %c0_i32_0 = arith.constant 0 : i32
    return %c0_i32, %arg1 : i32, i32
  }
  func.func @transform_2(%arg0: i32, %arg1: i32) -> (i32, i32) {
    %c0_i32 = arith.constant 0 : i32
    %c0_i32_0 = arith.constant 0 : i32
    return %c0_i32, %arg1 : i32, i32
  }
  func.func @transform_3(%arg0: i32, %arg1: i32) -> (i32, i32) {
    %c0_i32 = arith.constant 0 : i32
    %c0_i32_0 = arith.constant 0 : i32
    return %arg1, %c0_i32 : i32, i32
  }
  func.func @transform_4(%arg0: i32, %arg1: i32) -> (i32, i32) {
    %c0_i32 = arith.constant 0 : i32
    %c0_i32_0 = arith.constant 0 : i32
    %c0_i32_1 = arith.constant 0 : i32
    return %c0_i32, %c0_i32_0 : i32, i32
  }
  func.func @transform_5(%arg0: i32, %arg1: i32) -> (i32, i32) {
    %c0_i32 = arith.constant 0 : i32
    %c0_i32_0 = arith.constant 0 : i32
    return %arg0, %c0_i32 : i32, i32
  }
}

</mosaic_0001>

<bundles_post_ra>
// kernel: tpu_custom_call.1
= control target key start
LH: loop header
LB: loop body
LE: loop exit
PB: predicated region body
PF: predicated region fallthrough
CT: control target
= control target key end

     0   :  { %s2025_s0 = inlined_call_operand.hbm [shape: f32[128,128], index: 0, kind: input, shape index: {}]   ;;  %s2026_s1 = inlined_call_operand.hbm [shape: f32[128,512], index: 1, kind: input, shape index: {}]   ;;  %s2027_s2 = inlined_call_operand.vmem [shape: f32[1,512], index: 2, kind: input, shape index: {}]   ;;  %s2028_s3 = inlined_call_operand.hbm [shape: f32[512,128], index: 3, kind: input, shape index: {}]   ;;  %s2029_s4 = inlined_call_operand.vmem [shape: f32[1,128], index: 4, kind: input, shape index: {}]   ;;  %s2030_s5 = inlined_call_operand.hbm [shape: f32[128,128], index: 5, kind: output, shape index: {}]  }
   0x1   :  { %2043 = sst [smem:[#allocation21_spill]] %s2026_s1 }
   0x2   :  { %2044 = sst [smem:[#allocation22_spill]] %s2029_s4 }
   0x3   :  { %2045 = sst [smem:[#allocation23_spill]] %s2030_s5 }
   0x4   :  { %10 = vsyncpa [#allocation4], 0 }
   0x5   :  { %12 = vsyncpa [#allocation4 + $0x1], 0 }
   0x6   :  { %13 = vsyncpa [#allocation7], 0 }
   0x7   :  { %15 = vsyncpa [#allocation7 + $0x1], 0 }
   0x8   :  { %16 = vsyncpa [#allocation5], 0 }
   0x9   :  { %18 = vsyncpa [#allocation5 + $0x1], 0  ;;  %s1523_s18 = smov 0   ;;  %s1525_s19 = smov 0  }
   0xa   :  { %s1527_s20 = smov 0   ;;  %s1529_s21 = smov 0  }
   0xb   :  { %s1531_s22 = smov 0   ;;  %s1533_s23 = smov 0  }
   0xc   :  { %s1535_s24 = smov 0   ;;  %s1537_s25 = smov 0  }
   0xd   :  { %s1539_s26 = smov 0   ;;  %s1541_s27 = smov 0  }
   0xe   :  { %s1543_s28 = smov 0  }
   0xf LB: > { %2046 = sst [smem:[#allocation13_spill]] %s1446_s20  ;;  %s33_s29 = sadd.s32 1, %s1470_s26  ;;  %s1478_s28 = sphi %s1543_s28, %s24_s28   ;;  %s1474_s27 = sphi %s1541_s27, %s2084_s27   ;;  %s1470_s26 = sphi %s1539_s26, %s2090_s26   ;;  %s1466_s25 = sphi %s1537_s25, %s2082_s25   ;;  %s1462_s24 = sphi %s1535_s24, %s2089_s24   ;;  %s1458_s23 = sphi %s1533_s23, %s2081_s23   ;;  %s1454_s22 = sphi %s1531_s22, %s2088_s22   ;;  %s1450_s21 = sphi %s1529_s21, %s2087_s21   ;;  %s1446_s20 = sphi %s1527_s20, %s2079_s20   ;;  %s1442_s19 = sphi %s1525_s19, %s2086_s19   ;;  %s1438_s18 = sphi %s1523_s18, %s2085_s18  }
  0x10   : > { %2047 = sst [smem:[#allocation14_spill]] %s1458_s23  ;;  %p2033_p0 = scmp.eq.s32.totalorder %s1478_s28, 0 }
  0x11   : > { %2048 = sst [smem:[#allocation15_spill]] %s1466_s25  ;;  %p1580_p1 = scmp.ge.s32.totalorder %s33_s29, 2 }
  0x12   : > { %2049 = sst [smem:[#allocation16_spill]] %s1474_s27  ;;  %s69_s6 = sadd.s32 1, %s1446_s20 }
  0x13   : > { %p76_p2 = scmp.ne.s32.totalorder %s1446_s20, %s1442_s19  ;;  %s2092_s29 = smov (%p1580_p1, %s33_s29), 0 }
  0x14   : > { %2051 = sst [smem:[#allocation17_spill]] %s2092_s29  ;;  %s66_s7 = ssub.s32 %s1470_s26, %s2092_s29 }
  0x15   : > { %p78_p4 = por %p76_p2, %p2033_p0  ;;  %p2032_p5 = scmp.lt.s32.totalorder %s1478_s28, 4 }
  0x16   : > { %p67_p6 = scmp.eq.s32.totalorder %s66_s7, 0  ;;  %s229_s8 = sand.u32 1, %s1478_s28  }
  0x17   : > { %s231_s9 = sand.u32 1, %s1446_s20   ;;  %s986_s12 = sshll.u32 %s1470_s26, 8 }
  0x18   : > { %s1601_s10 = scalar_select %p67_p6, %s1446_s20, %s69_s6  }
  0x19   : > { %s1603_s11 = sshll.u32 %s231_s9, 8  ;;  %s2053_s1 = sld [smem:[#allocation21_spill]] }
  0x1a   : > { %2052 = sst [smem:[#allocation18_spill]] %s1601_s10  ;;  %s233_s16 = scalar_lea.vmem [#allocation6], %s1603_s11 }
  0x1b   : > { %s240_s17 = sshll.u32 %s233_s16, 4  ;;  %p1614_p7 = pnand %p2032_p5, %p78_p4  ;;  %s1618_s17 = int_to_ptr.vmem [resolvable:$true] %s240_s17 }
  0x1c   : > { %s1621_s6 = scalar_lea.sflag [#allocation7], %s229_s8 }
  0x1d   : > { %p2034_p10 = pneg %p1614_p7 }
  0x1f   : > { %s1609_s15 = scalar_lea.hbm %s2053_s1, %s986_s12  ;;  %s1267_s14 = scalar_lea.hbm %s2053_s1, 8192 }
  0x20   : > { %s1262_s9 = scalar_lea.hbm %s1609_s15, 4096  ;;  %p1268_p13 = scmp.lt.u32.totalorder %s1609_s15, %s2053_s1 }
  0x21   : > { %p1263_p9 = scmp.ne.s32.totalorder %s1609_s15, %s1262_s9  ;;  %p1269_p2 = scmp.lt.u32.totalorder %s1267_s14, %s1262_s9 }
  0x22   : > { %p1271_p6 = scmp.lt.u32.totalorder %s1262_s9, %s1609_s15 }
  0x23   : > { %p1265_p11 = pnand %p2034_p10, %p1263_p9  ;;  %p1270_p4 = por %p1269_p2, %p1268_p13 }
  0x25   : > { %p1266_p12 = pneg %p1265_p11  ;;  %p1272_p5 = por %p1271_p6, %p1270_p4 }
  0x27   : > { %p1273_p3 = pnand %p1272_p5, %p1266_p12 }
  0x29   : > { %1276 = shalt.err (!%p1273_p3)
}
  0x2a   : > { %s1277_s8 = scalar_lea.vmem %s1618_s17, 4096  ;;  %s1480_s12 = smov [#allocation6]  }
  0x2b   : > { %p1278_p9 = scmp.ne.s32.totalorder %s1618_s17, %s1277_s8  ;;  %s1282_s13 = sshll.u32 %s1480_s12, 4  ;;  %s1283_s13 = int_to_ptr.vmem [resolvable:$false] %s1282_s13 }
  0x2c   : > { %s1284_s29 = scalar_lea.vmem %s1283_s13, 8192  ;;  %p1285_p8 = scmp.lt.s32.totalorder %s1618_s17, %s1283_s13 }
  0x2d   : > { %p1280_p11 = pnand %p1278_p9, %p2034_p10  ;;  %p1286_p13 = scmp.lt.s32.totalorder %s1284_s29, %s1277_s8 }
  0x2f   : > { %p1281_p0 = pneg %p1280_p11  ;;  %p1287_p2 = por %p1286_p13, %p1285_p8 }
  0x31   : > { %p1288_p4 = pnand %p1287_p2, %p1281_p0 }
  0x33   : > { %1291 = shalt.err (!%p1288_p4)
}
  0x34   : > { %s1481_s9 = smov 512   ;;  %s1482_s14 = smov 256  }
  0x35   : > { %s1483_s16 = smov 16   ;;  %p277_p0 = scmp.lt.s32.totalorder %s1478_s28, 5 }
  0x36   : > { %1123 = dma.hbm_to_vmem [thread:$0]  (!%p1614_p7), %s1609_s15, 4096, %s1618_s17, %s1621_s6, %s1481_s9, %s1482_s14, %s1483_s16  }
  0x37   : > { %p2055_p3 = scmp.ge.s32.totalorder %s1478_s28, 1  ;;  %s1657_s12 = sadd.s32 4294967295, %s1478_s28  }
  0x38   : > { %s959_s13 = sadd.s32 4294967294, %s1478_s28   ;;  %s36_s29 = sadd.s32 1, %s1474_s27 }
  0x39   : > { %p1652_p5 = pnand %p2055_p3, %p277_p0  ;;  %s43_s1 = sadd.s32 1, %s1458_s23 }
  0x3a   : > { %s2094_s29 = smov (!%p1580_p1, %s36_s29), %s1474_s27  ;;  %p50_p8 = scmp.ne.s32.totalorder %s1458_s23, %s1454_s22 }
  0x3b   : > { %s2056_s8 = scalar_select %p1652_p5, 1, 0 }
  0x3c   : > { %p56_p12 = scmp.ne.s32.totalorder %s1454_s22, %s1450_s21  ;;  %p38_p6 = scmp.ge.s32.totalorder %s2094_s29, 2 }
  0x3d   : > { %p57_p9 = scmp.eq.s32.totalorder %s1657_s12, 0  ;;  %p2057_p11 = scmp.eq.s32.totalorder %s1478_s28, 0 }
  0x3e   : > { %p179_p2 = scmp.eq.s32.totalorder %s1657_s12, 3  ;;  %s2096_s29 = smov (%p38_p6, %s2094_s29), 0 }
  0x3f   : > { %p1672_p13 = por %p2057_p11, %p50_p8  ;;  %2059 = sst [smem:[#allocation19_spill]] %s2096_s29 }
  0x40   : > { %p1682_p1 = por %p57_p9, %p56_p12  ;;  %p2061_p4 = scmp.ne.s32.totalorder %s1442_s19, %s1438_s18 }
  0x41   : > { %s40_s9 = ssub.s32 %s1474_s27, %s2096_s29  ;;  %p1695_p3 = por %p179_p2, %p50_p8 }
  0x42   : > { %s2060_s30 = scalar_select %p1682_p1, 1, 0 }
  0x43   : > { %p1689_p0 = por %p2061_p4, %p57_p9  ;;  %p41_p11 = scmp.eq.s32.totalorder %s40_s9, 0 }
  0x44   : > { %s2063_s14 = scalar_select %p1695_p3, 1, 0 }
  0x45   : > { %s2062_s17 = scalar_select %p1689_p0, 1, 0 }
  0x46   : > { %p185_p10 = scmp.eq.s32.totalorder %s959_s13, 3  ;;  %s208_s16 = sand.u32 1, %s1458_s23  }
  0x47   : > { %s985_s10 = sshll.u32 %s1474_s27, 10  ;;  %s962_s18 = sshll.u32 %s208_s16, 6 }
  0x48   : > { %s1702_s20 = scalar_select %p41_p11, %s1458_s23, %s43_s1  }
  0x49   : > { %p1707_p6 = por %p185_p10, %p56_p12  ;;  %s1714_s29 = scalar_lea.hbm %s2025_s0, %s985_s10 }
  0x4a   : > { %2064 = sst [smem:[#allocation20_spill]] %s1702_s20  ;;  %p2066_p8 = scmp.lt.s32.totalorder %s1478_s28, 4 }
  0x4b   : > { %s2065_s5 = scalar_select %p1707_p6, 1, 0 }
  0x4c   : > { %p1720_p9 = pnand %p2066_p8, %p1672_p13  ;;  %s212_s13 = scalar_lea.vmem [#allocation3], %s962_s18 }
  0x4d   : > { %s219_s9 = sshll.u32 %s212_s13, 4  ;;  %s1726_s27 = scalar_lea.sflag [#allocation4], %s208_s16  ;;  %s1724_s9 = int_to_ptr.vmem [resolvable:$true] %s219_s9 }
  0x4e   : > { %s1292_s4 = scalar_lea.hbm %s1714_s29, 1024  ;;  %p1294_p12 = pneg %p1720_p9 }
  0x4f   : > { %p1293_p10 = scmp.ne.s32.totalorder %s1714_s29, %s1292_s4  ;;  %s1297_s15 = scalar_lea.hbm %s2025_s0, 2048 }
  0x50   : > { %p1298_p13 = scmp.lt.u32.totalorder %s1714_s29, %s2025_s0  ;;  %p1299_p11 = scmp.lt.u32.totalorder %s1297_s15, %s1292_s4 }
  0x51   : > { %p1295_p2 = pnand %p1294_p12, %p1293_p10  ;;  %p1301_p6 = scmp.lt.u32.totalorder %s1292_s4, %s1714_s29 }
  0x52   : > { %p1300_p8 = por %p1299_p11, %p1298_p13 }
  0x53   : > { %p1296_p4 = pneg %p1295_p2 }
  0x54   : > { %p1302_p3 = por %p1301_p6, %p1300_p8 }
  0x56   : > { %p1303_p0 = pnand %p1302_p3, %p1296_p4 }
  0x58   : > { %1306 = shalt.err (!%p1303_p0)
}
  0x59   : > { %s1307_s16 = scalar_lea.vmem %s1724_s9, 1024  ;;  %s1484_s18 = smov [#allocation3]  }
  0x5a   : > { %p1308_p10 = scmp.ne.s32.totalorder %s1724_s9, %s1307_s16  ;;  %s1312_s13 = sshll.u32 %s1484_s18, 4  ;;  %s1313_s13 = int_to_ptr.vmem [resolvable:$false] %s1312_s13 }
  0x5b   : > { %s1314_s20 = scalar_lea.vmem %s1313_s13, 2048  ;;  %p1315_p5 = scmp.lt.s32.totalorder %s1724_s9, %s1313_s13 }
  0x5c   : > { %p1310_p2 = pnand %p1308_p10, %p1294_p12  ;;  %p1316_p13 = scmp.lt.s32.totalorder %s1314_s20, %s1307_s16 }
  0x5e   : > { %p1311_p1 = pneg %p1310_p2  ;;  %p1317_p11 = por %p1316_p13, %p1315_p5 }
  0x60   : > { %p1318_p6 = pnand %p1317_p11, %p1311_p1 }
  0x62   : > { %1321 = shalt.err (!%p1318_p6)
}
  0x63   : > { %s1485_s23 = smov 128   ;;  %s1486_s4 = smov 8  }
  0x64   : > { %1120 = dma.hbm_to_vmem [thread:$0]  (!%p1720_p9), %s1714_s29, 1024, %s1724_s9, %s1726_s27, %s1485_s23, %s1485_s23, %s1486_s4  }
  0x65   : > { %s987_s25 = sshll.u32 %s1470_s26, 12  ;;  %s262_s10 = scalar_lea.vmem [#allocation8], %s1603_s11 }
  0x66   : > { %s269_s15 = sshll.u32 %s262_s10, 4  ;;  %s1762_s13 = scalar_lea.hbm %s2028_s3, %s987_s25  ;;  %s1764_s15 = int_to_ptr.vmem [resolvable:$true] %s269_s15 }
  0x67   : > { %s1322_s20 = scalar_lea.hbm %s1762_s13, 4096  ;;  %p2068_p1 = pneg %p1614_p7 }
  0x68   : > { %p1323_p5 = scmp.ne.s32.totalorder %s1762_s13, %s1322_s20  ;;  %s1327_s29 = scalar_lea.hbm %s2028_s3, 8192 }
  0x69   : > { %p1328_p9 = scmp.lt.u32.totalorder %s1762_s13, %s2028_s3  ;;  %p1329_p12 = scmp.lt.u32.totalorder %s1327_s29, %s1322_s20 }
  0x6a   : > { %p1325_p0 = pnand %p1323_p5, %p2068_p1  ;;  %p1331_p8 = scmp.lt.u32.totalorder %s1322_s20, %s1762_s13 }
  0x6b   : > { %p1330_p4 = por %p1329_p12, %p1328_p9 }
  0x6c   : > { %p1326_p3 = pneg %p1325_p0 }
  0x6d   : > { %p1332_p10 = por %p1331_p8, %p1330_p4 }
  0x6f   : > { %p1333_p2 = pnand %p1332_p10, %p1326_p3 }
  0x71   : > { %1336 = shalt.err (!%p1333_p2)
}
  0x72   : > { %s1337_s25 = scalar_lea.vmem %s1764_s15, 4096  ;;  %p2069_p11 = pmov %p2068_p1 }
  0x73   : > { %p1338_p13 = scmp.ne.s32.totalorder %s1764_s15, %s1337_s25  ;;  %s1487_s10 = smov [#allocation8]  }
  0x74   : > { %s1342_s16 = sshll.u32 %s1487_s10, 4  ;;  %s1343_s16 = int_to_ptr.vmem [resolvable:$false] %s1342_s16 }
  0x75   : > { %p1340_p6 = pnand %p1338_p13, %p2069_p11  ;;  %s1344_s18 = scalar_lea.vmem %s1343_s16, 8192 }
  0x76   : > { %p1345_p1 = scmp.lt.s32.totalorder %s1764_s15, %s1343_s16  ;;  %p1346_p0 = scmp.lt.s32.totalorder %s1344_s18, %s1337_s25 }
  0x77   : > { %p1341_p5 = pneg %p1340_p6 }
  0x78   : > { %p1347_p9 = por %p1346_p0, %p1345_p1 }
  0x7a   : > { %p1348_p12 = pnand %p1347_p9, %p1341_p5 }
  0x7c   : > { %1351 = shalt.err (!%p1348_p12)
}
  0x7d   : > { %1126 = dma.hbm_to_vmem [thread:$0]  (!%p1614_p7), %s1762_s13, 4096, %s1764_s15, %s1621_s6, %s1485_s23, %s1485_s23, %s1486_s4  }
  0x7e   : > { %p2070_p3 = scmp.ne.s32.totalorder %s2056_s8, 0 }
  0x7f   : > { %s1796_s20 = sand.u32 (!%p2070_p3), 1, %s1454_s22   ;;  %p2071_p4 = scmp.ne.s32.totalorder (!%p2070_p3), %s2060_s30, 0 }
  0x80   : > { %281 = sbr.rel (%p2070_p3) target bundleno = 704 (0x2c0), region = 40  ;;  %s972_s27 = sshll.u32 (!%p2070_p3), %s1796_s20, 6 }
  0x81   : > { %s284_s11 = scalar_lea.sflag (!%p2070_p3), [#allocation4], %s1796_s20  ;;  %s1800_s29 = scalar_lea.vmem (!%p2070_p3), [#allocation3], %s972_s27 }
  0x87   : > { %1425 = dma.done.wait (%p2071_p4), %s284_s11, 1024  }
  0x88   : > { %1427 = vsyncadd (%p2071_p4), %s284_s11, 4294966272  ;;  %s292_s7 = sand.u32 1, %s1657_s12   ;;  %s294_s6 = sand.u32 1, %s1442_s19  }
  0x89   : > { %s973_s8 = sshll.u32 %s294_s6, 8  ;;  %s293_s23 = scalar_lea.sflag [#allocation7], %s292_s7 }
  0x8a   : > { %s1808_s4 = scalar_lea.vmem [#allocation6], %s973_s8  ;;  %p2072_p7 = scmp.ne.s32.totalorder %s2062_s17, 0 }
  0x8c   : > { %1429 = dma.done.wait (%p2072_p7), %s293_s23, 8192  }
  0x8d   : > { %1431 = vsyncadd (%p2072_p7), %s293_s23, 4294959104  ;;  %s976_s15 = sshll.u32 %s1462_s24, 1  ;;  %s1821_s1 = scalar_lea.vmem [#allocation8], %s973_s8 }
  0x8e   : > { %p349_p8 = scmp.lt.s32.totalorder %s976_s15, 3  ;;  %s1823_s9 = scalar_lea.vmem [#allocation9], %s972_s27 }
  0x8f   : > { %p977_p10 = scmp.ne.s32.totalorder %s1462_s24, 0 }
  0x90   : > { %s2098_s15 = smov (!%p349_p8, %s976_s15), 3  ;;  %v1488_v0 = vmov (!%p977_p10), 0.0  }
  0x91   : > { %s351_s12 = scalar_lea.vmem %s2027_s2, %s2098_s15  ;;  %358 = sbr.rel (%p977_p10) target bundleno = 152 (0x98), region = 56  ;;  %359 = vst [vmem:[#allocation2] sm:$0xff] (!%p977_p10), %v1488_v0  ;;  %360 = vst [vmem:[#allocation2 + $0x8] sm:$0xff] (!%p977_p10), %v1488_v0 }
  0x92   : > { %361 = vst [vmem:[#allocation2 + $0x10] sm:$0xff] (!%p977_p10), %v1488_v0  ;;  %362 = vst [vmem:[#allocation2 + $0x18] sm:$0xff] (!%p977_p10), %v1488_v0 }
  0x93   : > { %363 = vst [vmem:[#allocation2 + $0x20] sm:$0xff] (!%p977_p10), %v1488_v0  ;;  %364 = vst [vmem:[#allocation2 + $0x28] sm:$0xff] (!%p977_p10), %v1488_v0 }
  0x94   : > { %365 = vst [vmem:[#allocation2 + $0x30] sm:$0xff] (!%p977_p10), %v1488_v0  ;;  %366 = vst [vmem:[#allocation2 + $0x38] sm:$0xff] (!%p977_p10), %v1488_v0 }
  0x98 PF: > { %v376_v1 = vld [vmem:[%s1808_s4 + $0x8] sm:$0xff]  ;;  %v378_v2 = vld [vmem:[%s1808_s4 + $0x18] sm:$0xff]  ;;  %v375_v3 = vld [vmem:[%s1808_s4] sm:$0xff]  ;;  %v1489_v8 = vmov 0.0   ;;  %p978_p2 = scmp.ne.s32.totalorder %s1462_s24, 1 }
  0x99   : > { %v1045_v4 = vpack.c.bf16 %v378_v2, %v376_v1  ;;  %v377_v5 = vld [vmem:[%s1808_s4 + $0x10] sm:$0xff]  ;;  %v380_v6 = vld [vmem:[%s1808_s4 + $0x28] sm:$0xff]  ;;  %v382_v7 = vld [vmem:[%s1808_s4 + $0x38] sm:$0xff]  ;;  %483 = vmatprep.mubr.f32.mxu0 %v1489_v8  ;;  %s2073_s18 = sld [smem:[#allocation22_spill]] (!%p978_p2) }
  0x9a   : > { %v1047_v9 = vpack.c.bf16 %v377_v5, %v375_v3  ;;  %v1049_v10 = vpack.c.bf16 %v382_v7, %v380_v6  ;;  %v379_v11 = vld [vmem:[%s1808_s4 + $0x20] sm:$0xff]  ;;  %v381_v12 = vld [vmem:[%s1808_s4 + $0x30] sm:$0xff]  ;;  %v384_v13 = vld [vmem:[%s1808_s4 + $0x48] sm:$0xff] }
  0x9b   : > { %1046 = vmatprep.subr.bf16.mxu0 %v1045_v4  ;;  %v386_v14 = vld [vmem:[%s1808_s4 + $0x58] sm:$0xff]  ;;  %v1051_v15 = vpack.c.bf16 %v381_v12, %v379_v11  ;;  %v383_v17 = vld [vmem:[%s1808_s4 + $0x40] sm:$0xff]  ;;  %v385_v18 = vld [vmem:[%s1808_s4 + $0x50] sm:$0xff] }
  0x9c   : > { %1048 = vmatpush1.bf16.msra.mxu0 %v1047_v9  ;;  %v1053_v16 = vpack.c.bf16 %v386_v14, %v384_v13  ;;  %v388_v19 = vld [vmem:[%s1808_s4 + $0x68] sm:$0xff]  ;;  %v390_v20 = vld [vmem:[%s1808_s4 + $0x78] sm:$0xff]  ;;  %v1055_v21 = vpack.c.bf16 %v385_v18, %v383_v17  ;;  %v387_v23 = vld [vmem:[%s1808_s4 + $0x60] sm:$0xff] }
  0x9d   : > { %1050 = vmatprep.subr.bf16.mxu0 %v1049_v10  ;;  %v1057_v22 = vpack.c.bf16 %v390_v20, %v388_v19  ;;  %v389_v24 = vld [vmem:[%s1808_s4 + $0x70] sm:$0xff]  ;;  %v392_v25 = vld [vmem:[%s1808_s4 + $0x88] sm:$0xff]  ;;  %v394_v26 = vld [vmem:[%s1808_s4 + $0x98] sm:$0xff] }
  0x9e   : > { %v1059_v27 = vpack.c.bf16 %v389_v24, %v387_v23  ;;  %v391_v28 = vld [vmem:[%s1808_s4 + $0x80] sm:$0xff]  ;;  %v393_v29 = vld [vmem:[%s1808_s4 + $0x90] sm:$0xff]  ;;  %v396_v30 = vld [vmem:[%s1808_s4 + $0xa8] sm:$0xff]  ;;  %v1061_v31 = vpack.c.bf16 %v394_v26, %v392_v25 }
  0x9f   : > { %v398_v32 = vld [vmem:[%s1808_s4 + $0xb8] sm:$0xff]  ;;  %v636_v33 = vld [vmem:[%s1821_s1 + $0x80] sm:$0xff]  ;;  %v637_v34 = vld [vmem:[%s1821_s1 + $0x88] sm:$0xff]  ;;  %v1063_v43 = vpack.c.bf16 %v393_v29, %v391_v28 }
  0xa0   : > { %1052 = vmatpush1.bf16.msra.mxu0 %v1051_v15  ;;  %v1077_v35 = vpack.c.bf16 %v637_v34, %v636_v33  ;;  %v620_v36 = vld [vmem:[%s1821_s1] sm:$0xff]  ;;  %v621_v37 = vld [vmem:[%s1821_s1 + $0x8] sm:$0xff]  ;;  %v638_v38 = vld [vmem:[%s1821_s1 + $0x90] sm:$0xff]  ;;  %v1065_v47 = vpack.c.bf16 %v398_v32, %v396_v30 }
  0xa1   : > { %1054 = vmatprep.subr.bf16.mxu0 %v1053_v16  ;;  %v1079_v39 = vpack.c.bf16 %v621_v37, %v620_v36  ;;  %v639_v40 = vld [vmem:[%s1821_s1 + $0x98] sm:$0xff]  ;;  %v622_v41 = vld [vmem:[%s1821_s1 + $0x10] sm:$0xff]  ;;  %v640_v45 = vld [vmem:[%s1821_s1 + $0xa0] sm:$0xff] }
  0xa2   : > { %v623_v42 = vld [vmem:[%s1821_s1 + $0x18] sm:$0xff]  ;;  %1078 = vmatprep.subr.bf16.mxu1 %v1077_v35  ;;  %v1081_v44 = vpack.c.bf16 %v639_v40, %v638_v38  ;;  %v641_v46 = vld [vmem:[%s1821_s1 + $0xa8] sm:$0xff]  ;;  %v395_v48 = vld [vmem:[%s1808_s4 + $0xa0] sm:$0xff] }
  0xa3   : > { %v397_v49 = vld [vmem:[%s1808_s4 + $0xb0] sm:$0xff]  ;;  %v400_v50 = vld [vmem:[%s1808_s4 + $0xc8] sm:$0xff]  ;;  %1080 = vmatpush3.bf16.msra.mxu1 %v1079_v39  ;;  %v1083_v51 = vpack.c.bf16 %v623_v42, %v622_v41  ;;  %v402_v52 = vld [vmem:[%s1808_s4 + $0xd8] sm:$0xff]  ;;  %v1085_v53 = vpack.c.bf16 %v641_v46, %v640_v45  ;;  %v409_v42 = vlaneseq }
  0xa4   : > { %1056 = vmatpush1.bf16.msra.mxu0 %v1055_v21  ;;  %1082 = vmatprep.subr.bf16.mxu1 %v1081_v44  ;;  %v624_v54 = vld [vmem:[%s1821_s1 + $0x20] sm:$0xff]  ;;  %v625_v55 = vld [vmem:[%s1821_s1 + $0x28] sm:$0xff]  ;;  %v1067_v56 = vpack.c.bf16 %v397_v49, %v395_v48  ;;  %v1069_v57 = vpack.c.bf16 %v402_v52, %v400_v50  ;;  %v401_v59 = vld [vmem:[%s1808_s4 + $0xd0] sm:$0xff] }
  0xa5   : > { %1058 = vmatprep.subr.bf16.mxu0 %v1057_v22  ;;  %v399_v58 = vld [vmem:[%s1808_s4 + $0xc0] sm:$0xff]  ;;  %v1087_v60 = vpack.c.bf16 %v625_v55, %v624_v54  ;;  %v404_v61 = vld [vmem:[%s1808_s4 + $0xe8] sm:$0xff]  ;;  %v406_v62 = vld [vmem:[%s1808_s4 + $0xf8] sm:$0xff] }
  0xa6   : > { %v1071_v63 = vpack.c.bf16 %v401_v59, %v399_v58  ;;  %v1073_v0 = vpack.c.bf16 %v406_v62, %v404_v61  ;;  %v403_v1 = vld [vmem:[%s1808_s4 + $0xe0] sm:$0xff]  ;;  %v405_v2 = vld [vmem:[%s1808_s4 + $0xf0] sm:$0xff]  ;;  %v368_v5 = vld [vmem:[%s1800_s29 + $0x8] sm:$0xff] }
  0xa7   : > { %1084 = vmatpush3.bf16.msra.mxu1 %v1083_v51  ;;  %v1075_v3 = vpack.c.bf16 %v405_v2, %v403_v1  ;;  %v367_v4 = vld [vmem:[%s1800_s29] sm:$0xff]  ;;  %v369_v6 = vld [vmem:[%s1800_s29 + $0x10] sm:$0xff]  ;;  %v370_v7 = vld [vmem:[%s1800_s29 + $0x18] sm:$0xff] }
  0xa8   : > { %1060 = vmatpush1.bf16.msra.mxu0 %v1059_v27  ;;  %1086 = vmatprep.subr.bf16.mxu1 %v1085_v53  ;;  %v371_v9 = vld [vmem:[%s1800_s29 + $0x20] sm:$0xff]  ;;  %v372_v10 = vld [vmem:[%s1800_s29 + $0x28] sm:$0xff]  ;;  %v373_v11 = vld [vmem:[%s1800_s29 + $0x30] sm:$0xff] }
  0xa9   : > { %1062 = vmatprep.subr.bf16.mxu0 %v1061_v31  ;;  %v374_v12 = vld [vmem:[%s1800_s29 + $0x38] sm:$0xff]  ;;  %v642_v13 = vld [vmem:[%s1821_s1 + $0xb0] sm:$0xff]  ;;  %v644_v19 = vld [vmem:[%s1821_s1 + $0xc0] sm:$0xff] }
  0xaa   : > { %v643_v14 = vld [vmem:[%s1821_s1 + $0xb8] sm:$0xff]  ;;  %v626_v16 = vld [vmem:[%s1821_s1 + $0x30] sm:$0xff]  ;;  %v645_v20 = vld [vmem:[%s1821_s1 + $0xc8] sm:$0xff] }
  0xab   : > { %1088 = vmatpush3.bf16.msra.mxu1 %v1087_v60  ;;  %v1089_v15 = vpack.c.bf16 %v643_v14, %v642_v13  ;;  %v627_v17 = vld [vmem:[%s1821_s1 + $0x38] sm:$0xff]  ;;  %v1093_v21 = vpack.c.bf16 %v645_v20, %v644_v19  ;;  %v629_v22 = vld [vmem:[%s1821_s1 + $0x48] sm:$0xff]  ;;  %v646_v24 = vld [vmem:[%s1821_s1 + $0xd0] sm:$0xff] }
  0xac   : > { %1064 = vmatpush1.bf16.msra.mxu0 %v1063_v43  ;;  %v1091_v18 = vpack.c.bf16 %v627_v17, %v626_v16  ;;  %v647_v25 = vld [vmem:[%s1821_s1 + $0xd8] sm:$0xff]  ;;  %v630_v27 = vld [vmem:[%s1821_s1 + $0x50] sm:$0xff]  ;;  %v648_v30 = vld [vmem:[%s1821_s1 + $0xe0] sm:$0xff]  ;;  %v410_v43 = vshrl.u32 %v409_v42, 7 }
  0xad   : > { %1066 = vmatprep.subr.bf16.mxu0 %v1065_v47  ;;  %1090 = vmatprep.subr.bf16.mxu1 %v1089_v15  ;;  %v1097_v26 = vpack.c.bf16 %v647_v25, %v646_v24  ;;  %v631_v28 = vld [vmem:[%s1821_s1 + $0x58] sm:$0xff]  ;;  %v649_v31 = vld [vmem:[%s1821_s1 + $0xe8] sm:$0xff]  ;;  %v632_v33 = vld [vmem:[%s1821_s1 + $0x60] sm:$0xff] }
  0xae   : > { %v1099_v29 = vpack.c.bf16 %v631_v28, %v630_v27  ;;  %v1101_v32 = vpack.c.bf16 %v649_v31, %v648_v30  ;;  %v633_v34 = vld [vmem:[%s1821_s1 + $0x68] sm:$0xff]  ;;  %v650_v36 = vld [vmem:[%s1821_s1 + $0xf0] sm:$0xff]  ;;  %v651_v37 = vld [vmem:[%s1821_s1 + $0xf8] sm:$0xff]  ;;  %v411_v44 = vsub.s32 0, %v410_v43  ;;  %v415_v46 = vsub.s32 1, %v410_v43 }
  0xaf   : > { %1092 = vmatpush3.bf16.msra.mxu1 %v1091_v18  ;;  %v1103_v35 = vpack.c.bf16 %v633_v34, %v632_v33  ;;  %v1105_v38 = vpack.c.bf16 %v651_v37, %v650_v36  ;;  %v634_v39 = vld [vmem:[%s1821_s1 + $0x70] sm:$0xff]  ;;  %v635_v40 = vld [vmem:[%s1821_s1 + $0x78] sm:$0xff]  ;;  %v407_v45 = vld [vmem:[%s351_s12] sm:$0x3] }
  0xb0   : > { %1068 = vmatpush1.bf16.msra.mxu0 %v1067_v56  ;;  %1094 = vmatprep.subr.bf16.mxu1 %v1093_v21  ;;  %v1107_v41 = vpack.c.bf16 %v635_v40, %v634_v39  ;;  %v1911_v47 = vrot.slane %v407_v45, %v411_v44  ;;  %v1913_v48 = vrot.slane %v407_v45, %v415_v46 }
  0xb1   : > { %1070 = vmatprep.subr.bf16.mxu0 %v1069_v57 }
  0xb4   : > { %1072 = vmatpush1.bf16.msra.mxu0 %v1071_v63 }
  0xb5   : > { %1074 = vmatprep.subr.bf16.mxu0 %v1073_v0 }
  0xb8   : > { %1076 = vmatpush1.bf16.msra.mxu0 %v1075_v3 }
  0xbb   : > { %484 = vmatmul.mubr.f32.vlgmr.msra.gmra.mrb[0].mxu0 %v367_v4 }
  0xbc   : > { %489 = vmatprep.mubr.f32.mxu0 %v1489_v8 }
  0xbf   : > { %490 = vmatmul.mubr.f32.gmra.mrb[2].mxu0 %v368_v5 }
  0xc0   : > { %495 = vmatprep.mubr.f32.mxu0 %v1489_v8 }
  0xc3   : > { %496 = vmatmul.mubr.f32.gmra.mrb[4].mxu0 %v369_v6 }
  0xc4   : > { %501 = vmatprep.mubr.f32.mxu0 %v1489_v8 }
  0xc7   : > { %502 = vmatmul.mubr.f32.gmra.mrb[6].mxu0 %v370_v7 }
  0xc8   : > { %507 = vmatprep.mubr.f32.mxu0 %v1489_v8 }
  0xcb   : > { %508 = vmatmul.mubr.f32.gmra.mrb[8].mxu0 %v371_v9 }
  0xcc   : > { %513 = vmatprep.mubr.f32.mxu0 %v1489_v8 }
  0xcf   : > { %514 = vmatmul.mubr.f32.gmra.mrb[10].mxu0 %v372_v10 }
  0xd0   : > { %519 = vmatprep.mubr.f32.mxu0 %v1489_v8 }
  0xd3   : > { %520 = vmatmul.mubr.f32.gmra.mrb[12].mxu0 %v373_v11 }
  0xd4   : > { %525 = vmatprep.mubr.f32.mxu0 %v1489_v8  ;;  %v628_v8 = vld [vmem:[%s1821_s1 + $0x40] sm:$0xff] }
  0xd5   : > { %v1095_v23 = vpack.c.bf16 %v629_v22, %v628_v8 }
  0xd7   : > { %526 = vmatmul.mubr.f32.gmra.mrb[14].mxu0 %v374_v12  ;;  %1096 = vmatpush3.bf16.msra.mxu1 %v1095_v23 }
  0xd8   : > { %1098 = vmatprep.subr.bf16.mxu1 %v1097_v26 }
  0xdb   : > { %1100 = vmatpush3.bf16.msra.mxu1 %v1099_v29 }
  0xdc   : > { %1102 = vmatprep.subr.bf16.mxu1 %v1101_v32 }
  0xdf   : > { %1104 = vmatpush3.bf16.msra.mxu1 %v1103_v35 }
  0xe0   : > { %1106 = vmatprep.subr.bf16.mxu1 %v1105_v38 }
  0xe3   : > { %1108 = vmatpush3.bf16.msra.mxu1 %v1107_v41 }
 0x18e   : > { %v485_v49 = vpop.f32.mrb[0].mxu0 }
 0x18f   : > { %v486_v50 = vadd.f32 %v485_v49, %v1911_v47  ;;  %v487_v51 = vpop.f32.mrb[1].mxu0 }
 0x190   : > { %v488_v52 = vadd.f32 %v487_v51, %v1913_v48 }
 0x191   : > { %v548_v53 = vmul.f32 0.70710677, %v486_v50  ;;  %v532_v18 = vmul.f32 0.5, %v486_v50 }
 0x192   : > { %v549_v54 = vmul.f32 0.70710677, %v488_v52  ;;  %v491_v55 = vpop.f32.mrb[2].mxu0  ;;  %v533_v16 = vmul.f32 0.5, %v488_v52 }
 0x193   : > { %1230 = verf.f32 %v548_v53  ;;  %v492_v56 = vadd.f32 %v491_v55, %v1911_v47  ;;  %v493_v57 = vpop.f32.mrb[3].mxu0 }
 0x194   : > { %1232 = verf.f32 %v549_v54  ;;  %v494_v58 = vadd.f32 %v493_v57, %v1913_v48 }
 0x195   : > { %v550_v59 = vmul.f32 0.70710677, %v492_v56  ;;  %v534_v31 = vmul.f32 0.5, %v492_v56 }
 0x196   : > { %v551_v60 = vmul.f32 0.70710677, %v494_v58  ;;  %v497_v61 = vpop.f32.mrb[4].mxu0  ;;  %v535_v27 = vmul.f32 0.5, %v494_v58 }
 0x197   : > { %1234 = verf.f32 %v550_v59  ;;  %v498_v62 = vadd.f32 %v497_v61, %v1911_v47  ;;  %v499_v63 = vpop.f32.mrb[5].mxu0 }
 0x198   : > { %1236 = verf.f32 %v551_v60  ;;  %v500_v0 = vadd.f32 %v499_v63, %v1913_v48 }
 0x199   : > { %v552_v1 = vmul.f32 0.70710677, %v498_v62  ;;  %v536_v45 = vmul.f32 0.5, %v498_v62 }
 0x19a   : > { %v553_v2 = vmul.f32 0.70710677, %v500_v0  ;;  %v503_v3 = vpop.f32.mrb[6].mxu0  ;;  %v537_v41 = vmul.f32 0.5, %v500_v0 }
 0x19b   : > { %1238 = verf.f32 %v552_v1  ;;  %v1922_v4 = vadd.f32 %v503_v3, %v1911_v47  ;;  %v505_v5 = vpop.f32.mrb[7].mxu0 }
 0x19c   : > { %1240 = verf.f32 %v553_v2  ;;  %v506_v6 = vadd.f32 %v505_v5, %v1913_v48 }
 0x19d   : > { %v1231_v7 = vpop.eup %1230  ;;  %v554_v9 = vmul.f32 0.70710677, %v1922_v4  ;;  %v538_v61 = vmul.f32 0.5, %v1922_v4 }
 0x19e   : > { %v1233_v10 = vpop.eup %1232  ;;  %v580_v11 = vadd.f32 1.0, %v1231_v7  ;;  %v555_v12 = vmul.f32 0.70710677, %v506_v6  ;;  %v509_v13 = vpop.f32.mrb[8].mxu0  ;;  %v539_v57 = vmul.f32 0.5, %v506_v6 }
 0x19f   : > { %1242 = verf.f32 %v554_v9  ;;  %v1927_v14 = vadd.f32 %v509_v13, %v1911_v47  ;;  %v511_v15 = vpop.f32.mrb[9].mxu0  ;;  %v581_v17 = vadd.f32 1.0, %v1233_v10 }
 0x1a0   : > { %1244 = verf.f32 %v555_v12  ;;  %v512_v19 = vadd.f32 %v511_v15, %v1913_v48  ;;  %v596_v26 = vmul.f32 %v580_v11, %v532_v18 }
 0x1a1   : > { %v1235_v20 = vpop.eup %1234  ;;  %v556_v21 = vmul.f32 0.70710677, %v1927_v14  ;;  %v597_v8 = vmul.f32 %v581_v17, %v533_v16 }
 0x1a2   : > { %v1237_v22 = vpop.eup %1236  ;;  %v582_v23 = vadd.f32 1.0, %v1235_v20  ;;  %v557_v24 = vmul.f32 0.70710677, %v512_v19  ;;  %v515_v25 = vpop.f32.mrb[10].mxu0  ;;  %v541_v6 = vmul.f32 0.5, %v512_v19 }
 0x1a3   : > { %v583_v28 = vadd.f32 1.0, %v1237_v22  ;;  %1246 = verf.f32 %v556_v21  ;;  %v1932_v29 = vadd.f32 %v515_v25, %v1911_v47  ;;  %v517_v30 = vpop.f32.mrb[11].mxu0  ;;  %716 = vmatprep.mubr.f32.mxu1 %v597_v8 }
 0x1a4   : > { %1248 = verf.f32 %v557_v24  ;;  %v518_v32 = vadd.f32 %v517_v30, %v1913_v48  ;;  %717 = vmatmul.mubr.f32.vlgmr.msra.gmra.mrb[0].mxu1 %v596_v26  ;;  %v598_v40 = vmul.f32 %v582_v23, %v534_v31 }
 0x1a5   : > { %v1239_v33 = vpop.eup %1238  ;;  %v558_v34 = vmul.f32 0.70710677, %v1932_v29  ;;  %v599_v35 = vmul.f32 %v583_v28, %v535_v27  ;;  %v542_v16 = vmul.f32 0.5, %v1932_v29 }
 0x1a6   : > { %v1241_v36 = vpop.eup %1240  ;;  %v584_v37 = vadd.f32 1.0, %v1239_v33  ;;  %v559_v38 = vmul.f32 0.70710677, %v518_v32  ;;  %v521_v39 = vpop.f32.mrb[12].mxu0  ;;  %v543_v13 = vmul.f32 0.5, %v518_v32 }
 0x1a7   : > { %v585_v42 = vadd.f32 1.0, %v1241_v36  ;;  %1250 = verf.f32 %v558_v34  ;;  %v522_v43 = vadd.f32 %v521_v39, %v1911_v47  ;;  %v523_v44 = vpop.f32.mrb[13].mxu0  ;;  %721 = vmatprep.mubr.f32.mxu1 %v599_v35  ;;  %v612_v34 = vld [vmem:[#allocation2] sm:$0xff]  ;;  %v613_v39 = vld [vmem:[#allocation2 + $0x8] sm:$0xff] }
 0x1a8   : > { %1252 = verf.f32 %v559_v38  ;;  %v524_v46 = vadd.f32 %v523_v44, %v1913_v48  ;;  %722 = vmatmul.mubr.f32.gmra.mrb[2].mxu1 %v598_v40  ;;  %v600_v56 = vmul.f32 %v584_v37, %v536_v45  ;;  %v614_v44 = vld [vmem:[#allocation2 + $0x10] sm:$0xff] }
 0x1a9   : > { %v1243_v49 = vpop.eup %1242  ;;  %v560_v50 = vmul.f32 0.70710677, %v522_v43  ;;  %v601_v51 = vmul.f32 %v585_v42, %v537_v41  ;;  %v544_v22 = vmul.f32 0.5, %v522_v43 }
 0x1aa   : > { %v1245_v52 = vpop.eup %1244  ;;  %v586_v53 = vadd.f32 1.0, %v1243_v49  ;;  %v561_v54 = vmul.f32 0.70710677, %v524_v46  ;;  %v527_v55 = vpop.f32.mrb[14].mxu0  ;;  %v545_v8 = vmul.f32 0.5, %v524_v46 }
 0x1ab   : > { %v587_v58 = vadd.f32 1.0, %v1245_v52  ;;  %1254 = verf.f32 %v560_v50  ;;  %v528_v59 = vadd.f32 %v527_v55, %v1911_v47  ;;  %v529_v60 = vpop.f32.mrb[15].mxu0  ;;  %726 = vmatprep.mubr.f32.mxu1 %v601_v51  ;;  %v540_v47 = vmul.f32 0.5, %v1927_v14  ;;  %v615_v51 = vld [vmem:[#allocation2 + $0x18] sm:$0xff] }
 0x1ac   : > { %1256 = verf.f32 %v561_v54  ;;  %v530_v62 = vadd.f32 %v529_v60, %v1913_v48  ;;  %727 = vmatmul.mubr.f32.gmra.mrb[4].mxu1 %v600_v56  ;;  %v602_v7 = vmul.f32 %v586_v53, %v538_v61  ;;  %v616_v56 = vld [vmem:[#allocation2 + $0x20] sm:$0xff]  ;;  %v617_v61 = vld [vmem:[#allocation2 + $0x28] sm:$0xff] }
 0x1ad   : > { %v1247_v63 = vpop.eup %1246  ;;  %v562_v0 = vmul.f32 0.70710677, %v528_v59  ;;  %v603_v1 = vmul.f32 %v587_v58, %v539_v57  ;;  %v546_v29 = vmul.f32 0.5, %v528_v59 }
 0x1ae   : > { %v1249_v2 = vpop.eup %1248  ;;  %v588_v3 = vadd.f32 1.0, %v1247_v63  ;;  %v563_v5 = vmul.f32 0.70710677, %v530_v62  ;;  %v547_v28 = vmul.f32 0.5, %v530_v62 }
 0x1af   : > { %v589_v9 = vadd.f32 1.0, %v1249_v2  ;;  %1258 = verf.f32 %v562_v0  ;;  %731 = vmatprep.mubr.f32.mxu1 %v603_v1  ;;  %v618_v2 = vld [vmem:[#allocation2 + $0x30] sm:$0xff] }
 0x1b0   : > { %1260 = verf.f32 %v563_v5  ;;  %732 = vmatmul.mubr.f32.gmra.mrb[6].mxu1 %v602_v7  ;;  %v604_v12 = vmul.f32 %v588_v3, %v540_v47 }
 0x1b1   : > { %v1251_v4 = vpop.eup %1250  ;;  %v605_v10 = vmul.f32 %v589_v9, %v541_v6  ;;  %v619_v9 = vld [vmem:[#allocation2 + $0x38] sm:$0xff] }
 0x1b2   : > { %v1253_v11 = vpop.eup %1252  ;;  %v590_v48 = vadd.f32 1.0, %v1251_v4 }
 0x1b3   : > { %v591_v15 = vadd.f32 1.0, %v1253_v11  ;;  %736 = vmatprep.mubr.f32.mxu1 %v605_v10 }
 0x1b4   : > { %737 = vmatmul.mubr.f32.gmra.mrb[8].mxu1 %v604_v12  ;;  %v606_v21 = vmul.f32 %v590_v48, %v542_v16  ;;  %v979_v48 = vld [vmem:[%s2073_s18] ss:$0 sm:$0xff] (!%p978_p2) }
 0x1b5   : > { %v1255_v17 = vpop.eup %1254  ;;  %v607_v18 = vmul.f32 %v591_v15, %v543_v13 }
 0x1b6   : > { %v1257_v19 = vpop.eup %1256  ;;  %v592_v20 = vadd.f32 1.0, %v1255_v17 }
 0x1b7   : > { %v593_v14 = vadd.f32 1.0, %v1257_v19  ;;  %741 = vmatprep.mubr.f32.mxu1 %v607_v18 }
 0x1b8   : > { %742 = vmatmul.mubr.f32.gmra.mrb[10].mxu1 %v606_v21  ;;  %v608_v27 = vmul.f32 %v592_v20, %v544_v22 }
 0x1b9   : > { %v1259_v23 = vpop.eup %1258  ;;  %v609_v24 = vmul.f32 %v593_v14, %v545_v8 }
 0x1ba   : > { %v1261_v25 = vpop.eup %1260  ;;  %v594_v26 = vadd.f32 1.0, %v1259_v23 }
 0x1bb   : > { %v595_v30 = vadd.f32 1.0, %v1261_v25  ;;  %746 = vmatprep.mubr.f32.mxu1 %v609_v24 }
 0x1bc   : > { %747 = vmatmul.mubr.f32.gmra.mrb[12].mxu1 %v608_v27  ;;  %v610_v32 = vmul.f32 %v594_v26, %v546_v29 }
 0x1bd   : > { %v611_v31 = vmul.f32 %v595_v30, %v547_v28 }
 0x1bf   : > { %751 = vmatprep.mubr.f32.mxu1 %v611_v31 }
 0x1c0   : > { %752 = vmatmul.mubr.f32.gmra.mrb[14].mxu1 %v610_v32 }
 0x277   : > { %v1021_v33 = vpop.f32.mrb[0].mxu1 }
 0x278   : > { %v1022_v35 = vpop.f32.mrb[1].mxu1 }
 0x279   : > { %v1023_v36 = vadd.f32 %v1022_v35, %v1021_v33 }
 0x27b   : > { %v757_v37 = vadd.f32 %v1023_v36, %v612_v34  ;;  %v1024_v38 = vpop.f32.mrb[2].mxu1 }
 0x27c   : > { %v1025_v40 = vpop.f32.mrb[3].mxu1 }
 0x27d   : > { %765 = vst [vmem:[#allocation2] sm:$0xff] %v757_v37  ;;  %v1026_v41 = vadd.f32 %v1025_v40, %v1024_v38 }
 0x27f   : > { %v758_v42 = vadd.f32 %v1026_v41, %v613_v39  ;;  %v1027_v43 = vpop.f32.mrb[4].mxu1 }
 0x280   : > { %v1028_v45 = vpop.f32.mrb[5].mxu1 }
 0x281   : > { %766 = vst [vmem:[#allocation2 + $0x8] sm:$0xff] %v758_v42  ;;  %v1029_v46 = vadd.f32 %v1028_v45, %v1027_v43 }
 0x283   : > { %v759_v49 = vadd.f32 %v1029_v46, %v614_v44  ;;  %v1030_v50 = vpop.f32.mrb[6].mxu1 }
 0x284   : > { %v1031_v52 = vpop.f32.mrb[7].mxu1  ;;  %v777_v11 = vld [vmem:[#allocation2] sm:$0xff] (!%p978_p2) }
 0x285   : > { %767 = vst [vmem:[#allocation2 + $0x10] sm:$0xff] %v759_v49  ;;  %v1032_v53 = vadd.f32 %v1031_v52, %v1030_v50  ;;  %v792_v13 = vadd.f32 (!%p978_p2), %v979_v48, %v777_v11 }
 0x287   : > { %v760_v54 = vadd.f32 %v1032_v53, %v615_v51  ;;  %v1033_v55 = vpop.f32.mrb[8].mxu1  ;;  %800 = vst [vmem:[%s1823_s9] sm:$0xff] (!%p978_p2), %v792_v13 }
 0x288   : > { %v1034_v57 = vpop.f32.mrb[9].mxu1  ;;  %v778_v12 = vld [vmem:[#allocation2 + $0x8] sm:$0xff] (!%p978_p2) }
 0x289   : > { %768 = vst [vmem:[#allocation2 + $0x18] sm:$0xff] %v760_v54  ;;  %v1035_v58 = vadd.f32 %v1034_v57, %v1033_v55  ;;  %v793_v15 = vadd.f32 (!%p978_p2), %v979_v48, %v778_v12 }
 0x28b   : > { %v761_v59 = vadd.f32 %v1035_v58, %v616_v56  ;;  %v1036_v60 = vpop.f32.mrb[10].mxu1  ;;  %801 = vst [vmem:[%s1823_s9 + $0x8] sm:$0xff] (!%p978_p2), %v793_v15 }
 0x28c   : > { %v1037_v62 = vpop.f32.mrb[11].mxu1  ;;  %v779_v16 = vld [vmem:[#allocation2 + $0x10] sm:$0xff] (!%p978_p2) }
 0x28d   : > { %769 = vst [vmem:[#allocation2 + $0x20] sm:$0xff] %v761_v59  ;;  %v1038_v63 = vadd.f32 %v1037_v62, %v1036_v60  ;;  %v794_v19 = vadd.f32 (!%p978_p2), %v979_v48, %v779_v16 }
 0x28f   : > { %v762_v0 = vadd.f32 %v1038_v63, %v617_v61  ;;  %v1039_v1 = vpop.f32.mrb[12].mxu1  ;;  %802 = vst [vmem:[%s1823_s9 + $0x10] sm:$0xff] (!%p978_p2), %v794_v19 }
 0x290   : > { %v1040_v3 = vpop.f32.mrb[13].mxu1  ;;  %v780_v17 = vld [vmem:[#allocation2 + $0x18] sm:$0xff] (!%p978_p2) }
 0x291   : > { %770 = vst [vmem:[#allocation2 + $0x28] sm:$0xff] %v762_v0  ;;  %v1041_v5 = vadd.f32 %v1040_v3, %v1039_v1  ;;  %v795_v20 = vadd.f32 (!%p978_p2), %v979_v48, %v780_v17 }
 0x293   : > { %v763_v7 = vadd.f32 %v1041_v5, %v618_v2  ;;  %v1042_v6 = vpop.f32.mrb[14].mxu1  ;;  %776 = sbr.rel (%p978_p2) target bundleno = 676 (0x2a4), region = 60  ;;  %803 = vst [vmem:[%s1823_s9 + $0x18] sm:$0xff] (!%p978_p2), %v795_v20 }
 0x294   : > { %v1043_v47 = vpop.f32.mrb[15].mxu1  ;;  %v781_v18 = vld [vmem:[#allocation2 + $0x20] sm:$0xff] (!%p978_p2) }
 0x295   : > { %771 = vst [vmem:[#allocation2 + $0x30] sm:$0xff] %v763_v7  ;;  %v1044_v4 = vadd.f32 %v1043_v47, %v1042_v6  ;;  %v796_v21 = vadd.f32 (!%p978_p2), %v979_v48, %v781_v18 }
 0x297   : > { %v764_v10 = vadd.f32 %v1044_v4, %v619_v9  ;;  %804 = vst [vmem:[%s1823_s9 + $0x20] sm:$0xff] (!%p978_p2), %v796_v21 }
 0x298   : > { %v782_v8 = vld [vmem:[#allocation2 + $0x28] sm:$0xff] (!%p978_p2) }
 0x299   : > { %772 = vst [vmem:[#allocation2 + $0x38] sm:$0xff] %v764_v10  ;;  %v797_v23 = vadd.f32 (!%p978_p2), %v979_v48, %v782_v8 }
 0x29b   : > { %805 = vst [vmem:[%s1823_s9 + $0x28] sm:$0xff] %v797_v23 }
 0x29c   : > { %v783_v14 = vld [vmem:[#allocation2 + $0x30] sm:$0xff] }
 0x29d   : > { %v798_v24 = vadd.f32 %v979_v48, %v783_v14 }
 0x29f   : > { %806 = vst [vmem:[%s1823_s9 + $0x30] sm:$0xff] %v798_v24 }
 0x2a0   : > { %v784_v22 = vld [vmem:[#allocation2 + $0x38] sm:$0xff] }
 0x2a1   : > { %v799_v25 = vadd.f32 %v979_v48, %v784_v22 }
 0x2a3   : > { %807 = vst [vmem:[%s1823_s9 + $0x38] sm:$0xff] %v799_v25 }
 0x2a4 PF: > { %s2074_s24 = sld [smem:[#allocation15_spill]]  ;;  %s822_s8 = sshll.u32 %s1823_s9, 4  ;;  %s1962_s8 = int_to_ptr.vmem [resolvable:$true] %s822_s8 }
 0x2a5   : > { %s2075_s7 = sld [smem:[#allocation23_spill]]  ;;  %s809_s23 = scalar_lea.sflag [#allocation5], %s1796_s20 }
 0x2a6   : > { %s1352_s4 = scalar_lea.vmem %s1962_s8, 1024  ;;  %p2076_p11 = scmp.ne.s32.totalorder %s2063_s14, 0 }
 0x2a7   : > { %p1353_p13 = scmp.ne.s32.totalorder %s1962_s8, %s1352_s4  ;;  %s1490_s15 = smov [#allocation9]  }
 0x2a8   : > { %s1356_s30 = sshll.u32 %s1490_s15, 4  ;;  %s1357_s30 = int_to_ptr.vmem [resolvable:$false] %s1356_s30 }
 0x2a9   : > { %p1354_p6 = pnand %p1353_p13, %p2076_p11  ;;  %s1358_s13 = scalar_lea.vmem %s1357_s30, 2048 }
 0x2aa   : > { %s988_s27 = sshll.u32 %s2074_s24, 10  ;;  %p1359_p1 = scmp.lt.s32.totalorder %s1962_s8, %s1357_s30 }
 0x2ab   : > { %s1959_s6 = scalar_lea.hbm %s2075_s7, %s988_s27  ;;  %p1355_p5 = pneg %p1354_p6 }
 0x2ac   : > { %p1360_p0 = scmp.lt.s32.totalorder %s1358_s13, %s1352_s4 }
 0x2ae   : > { %p1361_p9 = por %p1360_p0, %p1359_p1 }
 0x2b0   : > { %p1362_p12 = pnand %p1361_p9, %p1355_p5 }
 0x2b2   : > { %1365 = shalt.err (!%p1362_p12)
}
 0x2b3   : > { %s1366_s12 = scalar_lea.hbm %s1959_s6, 1024  ;;  %s1370_s17 = scalar_lea.hbm %s2075_s7, 2048 }
 0x2b4   : > { %p1367_p3 = scmp.ne.s32.totalorder %s1959_s6, %s1366_s12  ;;  %p1371_p8 = scmp.lt.u32.totalorder %s1959_s6, %s2075_s7 }
 0x2b5   : > { %p1372_p10 = scmp.lt.u32.totalorder %s1370_s17, %s1366_s12  ;;  %p1374_p13 = scmp.lt.u32.totalorder %s1366_s12, %s1959_s6 }
 0x2b6   : > { %p1368_p4 = pnand %p1367_p3, %p2076_p11 }
 0x2b7   : > { %p1373_p2 = por %p1372_p10, %p1371_p8 }
 0x2b8   : > { %p1369_p7 = pneg %p1368_p4 }
 0x2b9   : > { %p1375_p6 = por %p1374_p13, %p1373_p2 }
 0x2bb   : > { %p1376_p5 = pnand %p1375_p6, %p1369_p7 }
 0x2bd   : > { %1379 = shalt.err (!%p1376_p5)
}
 0x2be   : > { %s1491_s16 = smov 128   ;;  %s1492_s18 = smov 8  }
 0x2bf   : > { %1115 = dma.vmem_to_hbm [thread:$0]  (%p2076_p11), %s1962_s8, 1024, %s1959_s6, %s809_s23, %s1491_s16, %s1491_s16, %s1492_s18  }
 0x2c0 PF: > { %p1132_p1 = scmp.ge.s32.totalorder %s1478_s28, 2  ;;  %s837_s24 = sand.u32 1, %s1450_s21  }
 0x2c1   : > { %p2077_p0 = scmp.ne.s32.totalorder %s2065_s5, 0  ;;  %s838_s27 = scalar_lea.sflag [#allocation5], %s837_s24 }
 0x2c3   : > { %p1128_p9 = pnand %p1132_p1, %p2077_p0 }
 0x2c5   : > { %1433 = dma.done.wait (!%p1128_p9), %s838_s27, 1024  }
 0x2c6   : > { %1435 = vsyncadd (!%p1128_p9), %s838_s27, 4294966272  ;;  %s24_s28 = sadd.s32 1, %s1478_s28   ;;  %s2078_s11 = sld [smem:[#allocation13_spill]] }
 0x2c7   : > { %p21_p12 = scmp.ge.s32.totalorder %s24_s28, 6   ;;  %s2079_s20 = sld [smem:[#allocation18_spill]] }
 0x2c8   : > { %s2080_s14 = sld [smem:[#allocation14_spill]]  ;;  %s2081_s23 = sld [smem:[#allocation20_spill]] }
 0x2c9   : > { %s2082_s25 = sld [smem:[#allocation16_spill]]  ;;  %s2083_s29 = sld [smem:[#allocation17_spill]] }
 0x2ca   : > { %s2084_s27 = sld [smem:[#allocation19_spill]]  ;;  %s2085_s18 = smov %s1442_s19 }
 0x2cb   : > { %s2087_s21 = smov %s1454_s22  ;;  %s2089_s24 = smov %s1470_s26 }
 0x2cc   : > { %s2086_s19 = smov %s2078_s11  ;;  %23 = sbr.rel (!%p21_p12) target bundleno = 15 (0xf), region = 120 }
 0x2ce   : > { %s2088_s22 = smov %s2080_s14 }
 0x2cf   : > { %s2090_s26 = smov %s2083_s29 }
 0x2d3   :  { %843 = vsyncpa [#allocation4], 1 }
 0x2d4   :  { %845 = vsyncpa [#allocation4 + $0x1], 1 }
 0x2d5   :  { %846 = vsyncpa [#allocation7], 1 }
 0x2d6   :  { %848 = vsyncpa [#allocation7 + $0x1], 1 }
 0x2d7   :  { %849 = vsyncpa [#allocation5], 1 }
 0x2d8   :  { %851 = vsyncpa [#allocation5 + $0x1], 1 }

</bundles_post_ra>
